<compile_context>
chip_gen: v6e
topology: v6e:2x2x1
jax: 0.10.0
libtpu: 0.0.40
codegen_flags: <defaults>
</compile_context>

<pallas_src>
import functools

import numpy as np

import jax
import jax.numpy as jnp
from jax.experimental import pallas as pl
from jax.experimental.pallas import tpu as pltpu


def _round_up(x, m):
    return (x + m - 1) // m * m


def _pick_row_tile(num_nodes):
    # 256-wide square A_hat blocks balance sparsity capture vs per-grid-step
    # overhead; fall back to 128 for small graphs so that >=2 row blocks exist
    # whenever num_nodes > 128 (keeps both v7x TensorCores busy).
    tm = 256 if num_nodes > 256 else 128
    n_pad = _round_up(num_nodes, tm)
    return tm, n_pad


# ----------------------------------------------------------------------------
# Kernel 1: feature transform  XW = X @ W   (bf16 in, bf16 out, f32 MXU acc)
# ----------------------------------------------------------------------------
def _xw_kernel(x_ref, w_ref, o_ref):
    o_ref[...] = jnp.dot(
        x_ref[...], w_ref[...], preferred_element_type=jnp.float32
    ).astype(o_ref.dtype)


def _feature_transform(x_p, w_p, tm):
    n_pad, f_in = x_p.shape
    h_pad = w_p.shape[1]
    return pl.pallas_call(
        _xw_kernel,
        out_shape=jax.ShapeDtypeStruct((n_pad, h_pad), jnp.bfloat16),
        grid_spec=pltpu.PrefetchScalarGridSpec(
            num_scalar_prefetch=0,
            grid=(n_pad // tm,),
            in_specs=[
                # full-extent (unpadded) K block: f_in stays tiny.
                pl.BlockSpec((tm, f_in), lambda i: (i, 0)),
                pl.BlockSpec((f_in, h_pad), lambda i: (0, 0)),
            ],
            out_specs=pl.BlockSpec((tm, h_pad), lambda i: (i, 0)),
        ),
        compiler_params=pltpu.CompilerParams(
            dimension_semantics=("parallel",),
            vmem_limit_bytes=32 * 1024 * 1024,
        ),
    )(x_p, w_p)


# ----------------------------------------------------------------------------
# Kernel 2: block-sparse aggregation  out = relu(A_hat @ XW + b)
#   grid = (row_tile i, active-block slot s); scalar-prefetched tables give the
#   column-block index of the s-th nonzero A block in row tile i.
# ----------------------------------------------------------------------------
def _agg_kernel(cols_ref, nact_ref, a_ref, xw_ref, b_ref, o_ref):
    i = pl.program_id(0)
    s = pl.program_id(1)

    @pl.when(s == 0)
    def _():
        o_ref[...] = jnp.zeros_like(o_ref)

    # Only accumulate real (nonzero) blocks; padded slots repeat the previous
    # block index so their DMA is elided and their compute is skipped here.
    @pl.when(s < nact_ref[i])
    def _():
        o_ref[...] += jnp.dot(
            a_ref[...], xw_ref[...], preferred_element_type=jnp.float32
        )

    @pl.when(s == pl.num_programs(1) - 1)
    def _():
        o_ref[...] = jnp.maximum(o_ref[...] + b_ref[...], 0.0)


def _sparse_aggregate(a_hat, xw, b2d, cols_flat, nact, tm):
    n_pad = a_hat.shape[0]
    h_pad = xw.shape[1]
    num_row_tiles = n_pad // tm
    max_s = cols_flat.shape[0] // num_row_tiles

    return pl.pallas_call(
        _agg_kernel,
        out_shape=jax.ShapeDtypeStruct((n_pad, h_pad), jnp.float32),
        grid_spec=pltpu.PrefetchScalarGridSpec(
            num_scalar_prefetch=2,
            grid=(num_row_tiles, max_s),
            in_specs=[
                pl.BlockSpec(
                    (tm, tm),
                    lambda i, s, cols, nact: (i, cols[i * max_s + s]),
                ),
                # tn = full padded hidden dim -> each A block is read once.
                pl.BlockSpec(
                    (tm, h_pad),
                    lambda i, s, cols, nact: (cols[i * max_s + s], 0),
                ),
                pl.BlockSpec((1, h_pad), lambda i, s, cols, nact: (0, 0)),
            ],
            out_specs=pl.BlockSpec(
                (tm, h_pad), lambda i, s, cols, nact: (i, 0)
            ),
        ),
        compiler_params=pltpu.CompilerParams(
            dimension_semantics=("parallel", "arbitrary"),
            vmem_limit_bytes=32 * 1024 * 1024,
        ),
    )(cols_flat, nact, a_hat, xw, b2d)


# ----------------------------------------------------------------------------
# Glue: normalized adjacency (padded, bf16) + block table (numpy, host side)
# ----------------------------------------------------------------------------
def _build_norm_adj_padded(edge_index, num_nodes, n_pad):
    """Dense D^{-1/2} (A + I) D^{-1/2}, built directly at padded size, bf16.

    Matches torch_geometric gcn_norm / add_remaining_self_loops: existing
    self-loop edges are dropped and replaced by unit self-loops.
    """
    src, dst = edge_index[0], edge_index[1]
    ew = jnp.where(src != dst, 1.0, 0.0).astype(jnp.float32)
    a = jnp.zeros((n_pad, n_pad), jnp.float32)
    a = a.at[dst, src].add(ew)                      # messages flow src -> dst
    diag = jnp.arange(num_nodes)
    a = a.at[diag, diag].add(1.0)                   # self-loops (valid nodes)
    deg = a.sum(axis=1)
    dinv = jnp.where(deg > 0.0, jax.lax.rsqrt(deg), 0.0)
    # single fused normalize + bf16-cast pass over the padded array
    return (dinv[:, None] * a * dinv[None, :]).astype(jnp.bfloat16)


def _build_block_table(edge_index, num_nodes, n_pad, tm):
    """Per row-tile list of nonzero column-block indices of A_hat (numpy)."""
    src = np.asarray(edge_index[0])
    dst = np.asarray(edge_index[1])
    mask = src != dst
    rows = np.concatenate([dst[mask], np.arange(num_nodes)])
    cols = np.concatenate([src[mask], np.arange(num_nodes)])
    num_tiles = n_pad // tm
    pairs = np.unique(np.stack([rows // tm, cols // tm], axis=1), axis=0)

    per_row = [[] for _ in range(num_tiles)]
    for i, k in pairs:
        per_row[int(i)].append(int(k))
    max_s = max(1, max(len(p) for p in per_row))

    cols_tbl = np.zeros((num_tiles, max_s), dtype=np.int32)
    nact = np.zeros((num_tiles,), dtype=np.int32)
    for i, p in enumerate(per_row):
        nact[i] = len(p)
        if not p:                      # pure-padding row tile: dummy pointer
            p = [0]
        cols_tbl[i, : len(p)] = p
        cols_tbl[i, len(p):] = p[-1]   # repeat last index -> pipeline skips DMA
    return cols_tbl.reshape(-1), nact


@functools.partial(jax.jit, static_argnames=("n_pad", "tm"))
def gcn_forward_pallas(x, w, b, edge_index, cols_flat, nact, *, n_pad, tm):
    """relu(A_hat @ (X @ W) + b) via two Pallas calls (block-sparse agg)."""
    num_nodes, _ = x.shape
    hidden = w.shape[1]
    h_pad = _round_up(hidden, 128)

    a_hat = _build_norm_adj_padded(edge_index, num_nodes, n_pad)

    # Pad node rows / hidden cols to lane-dense shapes; f_in left unpadded.
    x_p = jnp.pad(x, ((0, n_pad - num_nodes), (0, 0))).astype(jnp.bfloat16)
    w_p = jnp.pad(w, ((0, 0), (0, h_pad - hidden))).astype(jnp.bfloat16)
    b_p = jnp.pad(b, (0, h_pad - hidden)).reshape(1, h_pad)

    xw = _feature_transform(x_p, w_p, tm)                       # bf16
    out_p = _sparse_aggregate(a_hat, xw, b_p, cols_flat, nact, tm)  # f32
    return out_p[:num_nodes, :hidden]


class GCN_GMM_Pallas:
    """JAX/Pallas port of GCN_GMM: relu(GCNConv(x, edge_index)); GMM unfitted -> None."""

    def __init__(self, input_dim, hidden_dim, output_dim, num_gaussians, key):
        # Glorot-uniform init (GCNConv default), zero bias, deterministic.
        limit = jnp.sqrt(6.0 / (input_dim + hidden_dim))
        self.weight = jax.random.uniform(
            key, (input_dim, hidden_dim), jnp.float32, -limit, limit)
        self.bias = jnp.zeros((hidden_dim,), jnp.float32)
        self.num_gaussians = num_gaussians
        self.output_dim = output_dim
        self.fitted = False
        # TODO(synk): sklearn GaussianMixture fit/predict_proba has no Pallas
        # equivalent; with fitted == False the forward returns None for x_gmm,
        # matching the PyTorch reference exactly.

    def __call__(self, x, edge_index):
        num_nodes = x.shape[0]
        tm, n_pad = _pick_row_tile(num_nodes)
        cols_flat, nact = _build_block_table(edge_index, num_nodes, n_pad, tm)
        out = gcn_forward_pallas(
            x, self.weight, self.bias, jnp.asarray(edge_index),
            jnp.asarray(cols_flat), jnp.asarray(nact), n_pad=n_pad, tm=tm)
        return out, None


if __name__ == "__main__":
    key = jax.random.PRNGKey(0)
    k_x, k_e, k_m = jax.random.split(key, 3)

    num_nodes = 16
    input_dim = 8
    hidden_dim = 32
    output_dim = 4
    num_gaussians = 3
    num_edges = 24

    x = jax.random.normal(k_x, (num_nodes, input_dim), jnp.float32)
    edge_index = jax.random.randint(k_e, (2, num_edges), 0, num_nodes, jnp.int32)

    model = GCN_GMM_Pallas(input_dim, hidden_dim, output_dim, num_gaussians, k_m)
    out, x_gmm = model(x, edge_index)
    out = jax.block_until_ready(out)

    # Pure-JAX f32 reference with identical gcn_norm / self-loop semantics;
    # tolerance covers the kernel's bf16 A_hat / XW MXU inputs.
    src, dst = edge_index[0], edge_index[1]
    ew = jnp.where(src != dst, 1.0, 0.0)
    a = jnp.zeros((num_nodes, num_nodes), jnp.float32).at[dst, src].add(ew)
    a = a + jnp.eye(num_nodes, dtype=jnp.float32)
    deg = a.sum(axis=1)
    dinv = jnp.where(deg > 0.0, 1.0 / jnp.sqrt(deg), 0.0)
    a_hat_ref = dinv[:, None] * a * dinv[None, :]
    ref = jnp.maximum(a_hat_ref @ (x @ model.weight) + model.bias, 0.0)

    assert out.shape == (num_nodes, hidden_dim)
    assert x_gmm is None
    assert jnp.allclose(out, ref, atol=2e-2, rtol=2e-2)

    print("KERNEL_OK")
</pallas_src>

<mosaic_0001>
module attributes {stable_mosaic.version = 11 : i64} {
  func.func private @main(%arg0: i32) attributes {dimension_semantics = [#tpu.dimension_semantics<core_parallel>], iteration_bounds = array<i64: 2>, tpu.core_type = #tpu.core_type<sc_scalar_subcore>, window_params = []} {
    return
  }
}

module attributes {stable_mosaic.version = 11 : i64} {
  func.func private @main(%arg0: i32) attributes {dimension_semantics = [#tpu.dimension_semantics<core_parallel>], iteration_bounds = array<i64: 2>, tpu.core_type = #tpu.core_type<sc_scalar_subcore>, window_params = []} {
    return
  }
}

module attributes {stable_mosaic.version = 11 : i64} {
  func.func @_xw_kernel(%arg0: i32, %arg1: memref<128x8xbf16, #tpu.memory_space<vmem>>, %arg2: memref<8x128xbf16, #tpu.memory_space<vmem>>, %arg3: memref<128x128xbf16, #tpu.memory_space<vmem>>) attributes {dimension_semantics = [#tpu.dimension_semantics<parallel>], iteration_bounds = array<i64: 1>, scalar_prefetch = 0 : i64, scratch_operands = 0 : i64, tpu.core_type = #tpu.core_type<tc>, window_params = [{transform_indices = @transform_0, window_bounds = array<i64: 128, 8>}, {pipeline_mode = #tpu.pipeline_mode<synchronous>, transform_indices = @transform_1, window_bounds = array<i64: 8, 128>}, {transform_indices = @transform_2, window_bounds = array<i64: 128, 128>}]} {
    %c0 = arith.constant 0 : index
    %c0_0 = arith.constant 0 : index
    %0 = vector.load %arg1[%c0, %c0_0] : memref<128x8xbf16, #tpu.memory_space<vmem>>, vector<128x8xbf16>
    %c0_1 = arith.constant 0 : index
    %c0_2 = arith.constant 0 : index
    %1 = vector.load %arg2[%c0_1, %c0_2] : memref<8x128xbf16, #tpu.memory_space<vmem>>, vector<8x128xbf16>
    %cst = arith.constant dense<0.000000e+00> : vector<128x128xf32>
    %2 = tpu.matmul %0, %1, %cst {dimension_numbers = #tpu.dot_dimension_numbers<[1], [0], [0], [1], [0, 0, 1, 1], [], []>} : vector<128x8xbf16>, vector<8x128xbf16>, vector<128x128xf32> -> vector<128x128xf32>
    %3 = arith.truncf %2 : vector<128x128xf32> to vector<128x128xbf16>
    %c0_3 = arith.constant 0 : index
    %c0_4 = arith.constant 0 : index
    %4 = vector.load %arg3[%c0_3, %c0_4] : memref<128x128xbf16, #tpu.memory_space<vmem>>, vector<128x128xbf16>
    tpu.vector_store %arg3[%c0_3, %c0_4], %3 {strides = array<i32>} : memref<128x128xbf16, #tpu.memory_space<vmem>>, vector<128x128xbf16>,
    return
  }
  func.func @transform_0(%arg0: i32) -> (i32, i32) {
    %c0_i32 = arith.constant 0 : i32
    %c0_i32_0 = arith.constant 0 : i32
    return %arg0, %c0_i32 : i32, i32
  }
  func.func @transform_1(%arg0: i32) -> (i32, i32) {
    %c0_i32 = arith.constant 0 : i32
    %c0_i32_0 = arith.constant 0 : i32
    %c0_i32_1 = arith.constant 0 : i32
    return %c0_i32, %c0_i32_0 : i32, i32
  }
  func.func @transform_2(%arg0: i32) -> (i32, i32) {
    %c0_i32 = arith.constant 0 : i32
    %c0_i32_0 = arith.constant 0 : i32
    return %arg0, %c0_i32 : i32, i32
  }
}

module attributes {stable_mosaic.version = 11 : i64} {
  func.func @_agg_kernel(%arg0: i32, %arg1: i32, %arg2: memref<1xi32, #tpu.memory_space<smem>>, %arg3: memref<1xi32, #tpu.memory_space<smem>>, %arg4: memref<128x128xbf16, #tpu.memory_space<vmem>>, %arg5: memref<128x128xbf16, #tpu.memory_space<vmem>>, %arg6: memref<1x128xf32, #tpu.memory_space<vmem>>, %arg7: memref<128x128xf32, #tpu.memory_space<vmem>>) attributes {dimension_semantics = [#tpu.dimension_semantics<parallel>, #tpu.dimension_semantics<arbitrary>], iteration_bounds = array<i64: 1, 1>, scalar_prefetch = 2 : i64, scratch_operands = 0 : i64, tpu.core_type = #tpu.core_type<tc>, window_params = [{transform_indices = @transform_0, window_bounds = array<i64: 128, 128>}, {transform_indices = @transform_1, window_bounds = array<i64: 128, 128>}, {pipeline_mode = #tpu.pipeline_mode<synchronous>, transform_indices = @transform_2, window_bounds = array<i64: 1, 128>}, {transform_indices = @transform_3, window_bounds = array<i64: 128, 128>}]} {
    %c0_i32 = arith.constant 0 : i32
    %0 = arith.cmpi eq, %arg1, %c0_i32 : i32
    %1 = arith.extui %0 : i1 to i32
    %c0_i32_0 = arith.constant 0 : i32
    %2 = arith.cmpi ne, %1, %c0_i32_0 : i32
    scf.if %2 {
      %cst = arith.constant 0.000000e+00 : f32
      %11 = vector.broadcast %cst : f32 to vector<128x128xf32>
      %c0 = arith.constant 0 : index
      %c0_4 = arith.constant 0 : index
      %12 = vector.load %arg7[%c0, %c0_4] : memref<128x128xf32, #tpu.memory_space<vmem>>, vector<128x128xf32>
      tpu.vector_store %arg7[%c0, %c0_4], %11 {strides = array<i32>} : memref<128x128xf32, #tpu.memory_space<vmem>>, vector<128x128xf32>,
    } else {
    }
    %3 = arith.index_cast %arg0 : i32 to index
    %4 = memref.load %arg3[%3] : memref<1xi32, #tpu.memory_space<smem>>
    %5 = arith.cmpi slt, %arg1, %4 : i32
    %6 = arith.extui %5 : i1 to i32
    %c0_i32_1 = arith.constant 0 : i32
    %7 = arith.cmpi ne, %6, %c0_i32_1 : i32
    scf.if %7 {
      %c0 = arith.constant 0 : index
      %c0_4 = arith.constant 0 : index
      %11 = vector.load %arg7[%c0, %c0_4] : memref<128x128xf32, #tpu.memory_space<vmem>>, vector<128x128xf32>
      %c0_5 = arith.constant 0 : index
      %c0_6 = arith.constant 0 : index
      %12 = vector.load %arg4[%c0_5, %c0_6] : memref<128x128xbf16, #tpu.memory_space<vmem>>, vector<128x128xbf16>
      %c0_7 = arith.constant 0 : index
      %c0_8 = arith.constant 0 : index
      %13 = vector.load %arg5[%c0_7, %c0_8] : memref<128x128xbf16, #tpu.memory_space<vmem>>, vector<128x128xbf16>
      %cst = arith.constant dense<0.000000e+00> : vector<128x128xf32>
      %14 = tpu.matmul %12, %13, %cst {dimension_numbers = #tpu.dot_dimension_numbers<[1], [0], [0], [1], [0, 0, 1, 1], [], []>} : vector<128x128xbf16>, vector<128x128xbf16>, vector<128x128xf32> -> vector<128x128xf32>
      %15 = arith.addf %11, %14 : vector<128x128xf32>
      %c0_9 = arith.constant 0 : index
      %c0_10 = arith.constant 0 : index
      %16 = vector.load %arg7[%c0_9, %c0_10] : memref<128x128xf32, #tpu.memory_space<vmem>>, vector<128x128xf32>
      tpu.vector_store %arg7[%c0_9, %c0_10], %15 {strides = array<i32>} : memref<128x128xf32, #tpu.memory_space<vmem>>, vector<128x128xf32>,
    } else {
    }
    %c0_i32_2 = arith.constant 0 : i32
    %8 = arith.cmpi eq, %arg1, %c0_i32_2 : i32
    %9 = arith.extui %8 : i1 to i32
    %c0_i32_3 = arith.constant 0 : i32
    %10 = arith.cmpi ne, %9, %c0_i32_3 : i32
    scf.if %10 {
      %c0 = arith.constant 0 : index
      %c0_4 = arith.constant 0 : index
      %11 = vector.load %arg7[%c0, %c0_4] : memref<128x128xf32, #tpu.memory_space<vmem>>, vector<128x128xf32>
      %c0_5 = arith.constant 0 : index
      %c0_6 = arith.constant 0 : index
      %12 = vector.load %arg6[%c0_5, %c0_6] : memref<1x128xf32, #tpu.memory_space<vmem>>, vector<1x128xf32>
      %13 = vector.broadcast %12 : vector<1x128xf32> to vector<128x128xf32>
      %14 = arith.addf %11, %13 : vector<128x128xf32>
      %cst = arith.constant 0.000000e+00 : f32
      %15 = vector.broadcast %cst : f32 to vector<128x128xf32>
      %16 = arith.maximumf %14, %15 : vector<128x128xf32>
      %c0_7 = arith.constant 0 : index
      %c0_8 = arith.constant 0 : index
      %17 = vector.load %arg7[%c0_7, %c0_8] : memref<128x128xf32, #tpu.memory_space<vmem>>, vector<128x128xf32>
      tpu.vector_store %arg7[%c0_7, %c0_8], %16 {strides = array<i32>} : memref<128x128xf32, #tpu.memory_space<vmem>>, vector<128x128xf32>,
    } else {
    }
    return
  }
  func.func @transform_0(%arg0: i32, %arg1: i32, %arg2: memref<1xi32, #tpu.memory_space<smem>>, %arg3: memref<1xi32, #tpu.memory_space<smem>>) -> (i32, i32) {
    %c1_i32 = arith.constant 1 : i32
    %0 = arith.muli %arg0, %c1_i32 : i32
    %1 = arith.addi %0, %arg1 : i32
    %2 = arith.index_cast %1 : i32 to index
    %3 = memref.load %arg2[%2] : memref<1xi32, #tpu.memory_space<smem>>
    %c0_i32 = arith.constant 0 : i32
    return %arg0, %3 : i32, i32
  }
  func.func @transform_1(%arg0: i32, %arg1: i32, %arg2: memref<1xi32, #tpu.memory_space<smem>>, %arg3: memref<1xi32, #tpu.memory_space<smem>>) -> (i32, i32) {
    %c1_i32 = arith.constant 1 : i32
    %0 = arith.muli %arg0, %c1_i32 : i32
    %1 = arith.addi %0, %arg1 : i32
    %2 = arith.index_cast %1 : i32 to index
    %3 = memref.load %arg2[%2] : memref<1xi32, #tpu.memory_space<smem>>
    %c0_i32 = arith.constant 0 : i32
    %c0_i32_0 = arith.constant 0 : i32
    return %3, %c0_i32 : i32, i32
  }
  func.func @transform_2(%arg0: i32, %arg1: i32, %arg2: memref<1xi32, #tpu.memory_space<smem>>, %arg3: memref<1xi32, #tpu.memory_space<smem>>) -> (i32, i32) {
    %c0_i32 = arith.constant 0 : i32
    %c0_i32_0 = arith.constant 0 : i32
    %c0_i32_1 = arith.constant 0 : i32
    return %c0_i32, %c0_i32_0 : i32, i32
  }
  func.func @transform_3(%arg0: i32, %arg1: i32, %arg2: memref<1xi32, #tpu.memory_space<smem>>, %arg3: memref<1xi32, #tpu.memory_space<smem>>) -> (i32, i32) {
    %c0_i32 = arith.constant 0 : i32
    %c0_i32_0 = arith.constant 0 : i32
    return %arg0, %c0_i32 : i32, i32
  }
}

</mosaic_0001>

<bundles_post_ra>
// kernel: gcn_forward_pallas.2
= control target key start
LH: loop header
LB: loop body
LE: loop exit
PB: predicated region body
PF: predicated region fallthrough
CT: control target
= control target key end

     0   :  { %vm94_vm0 = vcmask 1043456   ;;  %vm69_vm1 = vcmask 64512   ;;  %s487_s1 = inlined_call_operand.vmem [shape: bf16[8,128], index: 1, kind: input, shape index: {}]   ;;  %s488_s0 = inlined_call_operand.vmem [shape: bf16[128,8], index: 0, kind: input, shape index: {}]   ;;  %s489_s2 = inlined_call_operand.vmem [shape: bf16[128,128], index: 2, kind: output, shape index: {}]  }
   0x1   :  { %v28_v0 = vld [vmem:[%s487_s1] sm:$0xf]  ;;  %v407_v4 = vld [vmem:[%s488_s0 + $0x8] sm:$0xff]   ;;  %v409_v6 = vld [vmem:[%s488_s0 + $0x10] sm:$0xff]  }
   0x2   :  { %403 = vmatprep.subr.msk.bf16.mxu0 %vm94_vm0, %v28_v0  ;;  %404 = vmatprep.subr.msk.bf16.mxu1 %vm94_vm0, %v28_v0  ;;  %v96_v1 = vsel %vm94_vm0, %v28_v0, 0  ;;  %v405_v2 = vld [vmem:[%s488_s0] sm:$0xff]   ;;  %v408_v5 = vld [vmem:[%s488_s0 + $0x28] sm:$0xff]   ;;  %v410_v7 = vld [vmem:[%s488_s0 + $0x30] sm:$0xff]  }
   0x3   :  { %384 = vmatpush3.bf16.msra.mxu0 %v96_v1  ;;  %402 = vmatpush3.bf16.msra.mxu1 %v96_v1  ;;  %v406_v3 = vld [vmem:[%s488_s0 + $0x20] sm:$0xff]   ;;  %v411_v8 = vld [vmem:[%s488_s0 + $0x18] sm:$0xff]  }
   0x4   :  { %385 = vmatprep.mubr.msk.bf16.mxu0 %vm69_vm1, %v405_v2  ;;  %393 = vmatprep.mubr.msk.bf16.mxu1 %vm69_vm1, %v406_v3  ;;  %v412_v9 = vld [vmem:[%s488_s0 + $0x38] sm:$0xff]  }
   0x6   :  { %386 = vmatmul.mubr.msk.bf16.vlgmr.msra.gmra.mxu0 %vm69_vm1, %v407_v4  ;;  %394 = vmatmul.mubr.msk.bf16.vlgmr.msra.gmra.mxu1 %vm69_vm1, %v408_v5 }
   0x7   :  { %389 = vmatprep.mubr.msk.bf16.mxu0 %vm69_vm1, %v409_v6  ;;  %397 = vmatprep.mubr.msk.bf16.mxu1 %vm69_vm1, %v410_v7 }
   0xe   :  { %390 = vmatmul.mubr.msk.bf16.gmra.mxu0 %vm69_vm1, %v411_v8  ;;  %398 = vmatmul.mubr.msk.bf16.gmra.mxu1 %vm69_vm1, %v412_v9 }
  0xc6   :  { %v387_v10 = vpop.f32.mrf.mxu0  ;;  %v395_v11 = vpop.f32.mrf.mxu1 }
  0xc8   :  { %v132_v12 = vpop.f32.mrf.mxu0  ;;  %v164_v13 = vpop.f32.mrf.mxu1 }
  0xca   :  { %v388_v14 = vpop.f32.mrf.mxu0  ;;  %v396_v16 = vpop.f32.mrf.mxu1 }
  0xcb   :  { %v335_v15 = vpack.c.bf16 %v388_v14, %v387_v10  ;;  %v355_v17 = vpack.c.bf16 %v396_v16, %v395_v11 }
  0xcc   :  { %v135_v18 = vpop.f32.mrf.mxu0  ;;  %v167_v20 = vpop.f32.mrf.mxu1 }
  0xcd   :  { %367 = vst [vmem:[%s489_s2 + $0x8] sm:$0xff] %v335_v15   ;;  %v330_v19 = vpack.c.bf16 %v135_v18, %v132_v12  ;;  %371 = vst [vmem:[%s489_s2 + $0x28] sm:$0xff] %v355_v17   ;;  %v350_v21 = vpack.c.bf16 %v167_v20, %v164_v13 }
  0xce   :  { %v391_v22 = vpop.f32.mrf.mxu0  ;;  %v399_v23 = vpop.f32.mrf.mxu1 }
  0xcf   :  { %331 = vst [vmem:[%s489_s2] sm:$0xff] %v330_v19   ;;  %370 = vst [vmem:[%s489_s2 + $0x20] sm:$0xff] %v350_v21  }
  0xd0   :  { %v148_v24 = vpop.f32.mrf.mxu0  ;;  %v180_v25 = vpop.f32.mrf.mxu1 }
  0xd2   :  { %v392_v26 = vpop.f32.mrf.mxu0  ;;  %v400_v28 = vpop.f32.mrf.mxu1 }
  0xd3   :  { %v345_v27 = vpack.c.bf16 %v392_v26, %v391_v22  ;;  %v365_v29 = vpack.c.bf16 %v400_v28, %v399_v23 }
  0xd4   :  { %v151_v30 = vpop.f32.mrf.mxu0  ;;  %v183_v32 = vpop.f32.mrf.mxu1 }
  0xd5   :  { %369 = vst [vmem:[%s489_s2 + $0x18] sm:$0xff] %v345_v27   ;;  %v340_v31 = vpack.c.bf16 %v151_v30, %v148_v24  ;;  %373 = vst [vmem:[%s489_s2 + $0x38] sm:$0xff] %v365_v29   ;;  %v360_v33 = vpack.c.bf16 %v183_v32, %v180_v25 }
  0xd7   :  { %368 = vst [vmem:[%s489_s2 + $0x10] sm:$0xff] %v340_v31   ;;  %372 = vst [vmem:[%s489_s2 + $0x30] sm:$0xff] %v360_v33  }

// kernel: gcn_forward_pallas.3
= control target key start
LH: loop header
LB: loop body
LE: loop exit
PB: predicated region body
PF: predicated region fallthrough
CT: control target
= control target key end

     0   :  { %v559_v0 = vmov 0.0   ;;  %s875_s0 = inlined_call_operand.<no memory space> [shape: s32[1], index: 0, kind: input, shape index: {}]   ;;  %s876_s1 = inlined_call_operand.<no memory space> [shape: s32[1], index: 1, kind: input, shape index: {}]   ;;  %s877_s4 = inlined_call_operand.vmem [shape: f32[1,128], index: 4, kind: input, shape index: {}]   ;;  %s878_s5 = inlined_call_operand.vmem [shape: f32[128,128], index: 5, kind: output, shape index: {}]   ;;  %s879_s2 = inlined_call_operand.vmem [shape: bf16[128,128], index: 2, kind: input, shape index: {}]   ;;  %s880_s3 = inlined_call_operand.vmem [shape: bf16[128,128], index: 3, kind: input, shape index: {}]  }
   0x1   :  { %p51_p0 = scmp.lt.s32.totalorder %s875_s0, 0  ;;  %s457_s22 = sshll.u32 %s875_s0, 4  ;;  %72 = vst [vmem:[%s878_s5] sm:$0xff] %v559_v0  ;;  %73 = vst [vmem:[%s878_s5 + $0x8] sm:$0xff] %v559_v0 }
   0x2   :  { %74 = vst [vmem:[%s878_s5 + $0x10] sm:$0xff] %v559_v0  ;;  %75 = vst [vmem:[%s878_s5 + $0x18] sm:$0xff] %v559_v0  ;;  %p60_p1 = scmp.lt.s32.totalorder %s457_s22, 15  ;;  %p460_p2 = scmp.le.s32.totalorder %s876_s1, 0 }
   0x3   :  { %76 = vst [vmem:[%s878_s5 + $0x20] sm:$0xff] %v559_v0  ;;  %77 = vst [vmem:[%s878_s5 + $0x28] sm:$0xff] %v559_v0  ;;  %s882_s0 = smov (!%p51_p0, %s875_s0), 0 }
   0x4   :  { %78 = vst [vmem:[%s878_s5 + $0x30] sm:$0xff] %v559_v0  ;;  %79 = vst [vmem:[%s878_s5 + $0x38] sm:$0xff] %v559_v0  ;;  %s884_s22 = smov (!%p60_p1, %s457_s22), 15  ;;  %s456_s10 = sshll.u32 %s882_s0, 2 }
   0x5   :  { %80 = vst [vmem:[%s878_s5 + $0x40] sm:$0xff] %v559_v0  ;;  %81 = vst [vmem:[%s878_s5 + $0x48] sm:$0xff] %v559_v0  ;;  %s654_s13 = scalar_lea.vmem %s879_s2, %s456_s10  ;;  %s458_s14 = sshll.u32 %s884_s22, 2 }
   0x6   :  { %82 = vst [vmem:[%s878_s5 + $0x50] sm:$0xff] %v559_v0  ;;  %83 = vst [vmem:[%s878_s5 + $0x58] sm:$0xff] %v559_v0  ;;  %s659_s17 = scalar_lea.vmem %s880_s3, %s458_s14  ;;  %92 = sbr.rel (%p460_p2) target bundleno = 254 (0xfe), region = 21 }
   0x7   :  { %84 = vst [vmem:[%s878_s5 + $0x60] sm:$0xff] %v559_v0  ;;  %85 = vst [vmem:[%s878_s5 + $0x68] sm:$0xff] %v559_v0 }
   0x8   :  { %86 = vst [vmem:[%s878_s5 + $0x70] sm:$0xff] %v559_v0  ;;  %87 = vst [vmem:[%s878_s5 + $0x78] sm:$0xff] %v559_v0 }
   0xb   :  { %v543_v1 = vld [vmem:[%s659_s17 + $0x38] sm:$0xff]   ;;  %v544_v2 = vld [vmem:[%s659_s17 + $0x30] sm:$0xff]   ;;  %v545_v3 = vld [vmem:[%s659_s17 + $0x28] sm:$0xff]  }
   0xc   :  { %494 = vmatprep.subr.bf16.mxu0 %v543_v1  ;;  %526 = vmatprep.subr.bf16.mxu1 %v543_v1  ;;  %v546_v4 = vld [vmem:[%s659_s17 + $0x20] sm:$0xff]   ;;  %v547_v7 = vld [vmem:[%s659_s17 + $0x18] sm:$0xff]   ;;  %v548_v8 = vld [vmem:[%s659_s17 + $0x10] sm:$0xff]  }
   0xd   :  { %495 = vmatpush3.bf16.msra.mxu0 %v543_v1  ;;  %534 = vmatpush3.bf16.msra.mxu1 %v543_v1  ;;  %v551_v5 = vld [vmem:[%s654_s13] sm:$0xff]   ;;  %v549_v9 = vld [vmem:[%s659_s17 + $0x8] sm:$0xff]   ;;  %v555_v13 = vld [vmem:[%s654_s13 + $0x10] sm:$0xff]  }
   0xe   :  { %496 = vmatprep.subr.bf16.mxu0 %v544_v2  ;;  %527 = vmatprep.subr.bf16.mxu1 %v544_v2  ;;  %v552_v6 = vld [vmem:[%s654_s13 + $0x20] sm:$0xff]   ;;  %v553_v11 = vld [vmem:[%s654_s13 + $0x8] sm:$0xff]   ;;  %v556_v14 = vld [vmem:[%s654_s13 + $0x30] sm:$0xff]  }
   0xf   :  { %510 = vmatprep.mubr.bf16.mxu0 %v551_v5  ;;  %518 = vmatprep.mubr.bf16.mxu1 %v552_v6  ;;  %v550_v10 = vld [vmem:[%s659_s17] sm:$0xff]   ;;  %v554_v12 = vld [vmem:[%s654_s13 + $0x28] sm:$0xff]   ;;  %v557_v15 = vld [vmem:[%s654_s13 + $0x18] sm:$0xff]  }
  0x10   :  { %v558_v16 = vld [vmem:[%s654_s13 + $0x38] sm:$0xff]   ;;  %v95_v17 = vld [vmem:[%s878_s5 + $0x10] sm:$0xff]  ;;  %v93_v21 = vld [vmem:[%s878_s5] sm:$0xff] }
  0x11   :  { %497 = vmatpush3.bf16.msra.mxu0 %v544_v2  ;;  %535 = vmatpush3.bf16.msra.mxu1 %v544_v2  ;;  %v103_v18 = vld [vmem:[%s878_s5 + $0x50] sm:$0xff]  ;;  %v101_v22 = vld [vmem:[%s878_s5 + $0x40] sm:$0xff]  ;;  %v96_v27 = vld [vmem:[%s878_s5 + $0x18] sm:$0xff] }
  0x12   :  { %498 = vmatprep.subr.bf16.mxu0 %v545_v3  ;;  %528 = vmatprep.subr.bf16.mxu1 %v545_v3  ;;  %v104_v28 = vld [vmem:[%s878_s5 + $0x58] sm:$0xff]  ;;  %v94_v33 = vld [vmem:[%s878_s5 + $0x8] sm:$0xff]  ;;  %v99_v39 = vld [vmem:[%s878_s5 + $0x30] sm:$0xff] }
  0x13   :  { %v102_v34 = vld [vmem:[%s878_s5 + $0x48] sm:$0xff]  ;;  %v107_v40 = vld [vmem:[%s878_s5 + $0x70] sm:$0xff]  ;;  %v97_v45 = vld [vmem:[%s878_s5 + $0x20] sm:$0xff] }
  0x14   :  { %v105_v46 = vld [vmem:[%s878_s5 + $0x60] sm:$0xff]  ;;  %v100_v51 = vld [vmem:[%s878_s5 + $0x38] sm:$0xff]  ;;  %v98_v57 = vld [vmem:[%s878_s5 + $0x28] sm:$0xff] }
  0x15   :  { %499 = vmatpush3.bf16.msra.mxu0 %v545_v3  ;;  %536 = vmatpush3.bf16.msra.mxu1 %v545_v3  ;;  %v108_v52 = vld [vmem:[%s878_s5 + $0x78] sm:$0xff]  ;;  %v106_v58 = vld [vmem:[%s878_s5 + $0x68] sm:$0xff] }
  0x16   :  { %500 = vmatprep.subr.bf16.mxu0 %v546_v4  ;;  %529 = vmatprep.subr.bf16.mxu1 %v546_v4 }
  0x19   :  { %501 = vmatpush3.bf16.msra.mxu0 %v546_v4  ;;  %537 = vmatpush3.bf16.msra.mxu1 %v546_v4 }
  0x1a   :  { %502 = vmatprep.subr.bf16.mxu0 %v547_v7  ;;  %530 = vmatprep.subr.bf16.mxu1 %v547_v7 }
  0x1d   :  { %503 = vmatpush3.bf16.msra.mxu0 %v547_v7  ;;  %538 = vmatpush3.bf16.msra.mxu1 %v547_v7 }
  0x1e   :  { %504 = vmatprep.subr.bf16.mxu0 %v548_v8  ;;  %531 = vmatprep.subr.bf16.mxu1 %v548_v8 }
  0x21   :  { %505 = vmatpush3.bf16.msra.mxu0 %v548_v8  ;;  %539 = vmatpush3.bf16.msra.mxu1 %v548_v8 }
  0x22   :  { %506 = vmatprep.subr.bf16.mxu0 %v549_v9  ;;  %532 = vmatprep.subr.bf16.mxu1 %v549_v9 }
  0x25   :  { %507 = vmatpush3.bf16.msra.mxu0 %v549_v9  ;;  %540 = vmatpush3.bf16.msra.mxu1 %v549_v9 }
  0x26   :  { %508 = vmatprep.subr.bf16.mxu0 %v550_v10  ;;  %533 = vmatprep.subr.bf16.mxu1 %v550_v10 }
  0x29   :  { %509 = vmatpush3.bf16.msra.mxu0 %v550_v10  ;;  %541 = vmatpush3.bf16.msra.mxu1 %v550_v10 }
  0x2c   :  { %511 = vmatmul.mubr.bf16.vlgmr.msra.gmra.mxu0 %v553_v11  ;;  %519 = vmatmul.mubr.bf16.vlgmr.msra.gmra.mxu1 %v554_v12 }
  0x2d   :  { %514 = vmatprep.mubr.bf16.mxu0 %v555_v13  ;;  %522 = vmatprep.mubr.bf16.mxu1 %v556_v14 }
  0x34   :  { %515 = vmatmul.mubr.bf16.gmra.mxu0 %v557_v15  ;;  %523 = vmatmul.mubr.bf16.gmra.mxu1 %v558_v16 }
  0xec   :  { %v512_v19 = vpop.f32.mrf.mxu0  ;;  %v520_v20 = vpop.f32.mrf.mxu1 }
  0xed   :  { %v336_v23 = vadd.f32 %v512_v19, %v95_v17  ;;  %v344_v24 = vadd.f32 %v520_v20, %v103_v18 }
  0xee   :  { %v271_v25 = vpop.f32.mrf.mxu0  ;;  %v303_v26 = vpop.f32.mrf.mxu1 }
  0xef   :  { %352 = vst [vmem:[%s878_s5 + $0x10] sm:$0xff] %v336_v23  ;;  %360 = vst [vmem:[%s878_s5 + $0x50] sm:$0xff] %v344_v24  ;;  %v334_v29 = vadd.f32 %v271_v25, %v93_v21  ;;  %v342_v30 = vadd.f32 %v303_v26, %v101_v22 }
  0xf0   :  { %v513_v31 = vpop.f32.mrf.mxu0  ;;  %v521_v32 = vpop.f32.mrf.mxu1 }
  0xf1   :  { %350 = vst [vmem:[%s878_s5] sm:$0xff] %v334_v29  ;;  %358 = vst [vmem:[%s878_s5 + $0x40] sm:$0xff] %v342_v30  ;;  %v337_v35 = vadd.f32 %v513_v31, %v96_v27  ;;  %v345_v36 = vadd.f32 %v521_v32, %v104_v28 }
  0xf2   :  { %v274_v37 = vpop.f32.mrf.mxu0  ;;  %v306_v38 = vpop.f32.mrf.mxu1 }
  0xf3   :  { %353 = vst [vmem:[%s878_s5 + $0x18] sm:$0xff] %v337_v35  ;;  %361 = vst [vmem:[%s878_s5 + $0x58] sm:$0xff] %v345_v36  ;;  %v335_v41 = vadd.f32 %v274_v37, %v94_v33  ;;  %v343_v42 = vadd.f32 %v306_v38, %v102_v34 }
  0xf4   :  { %v516_v43 = vpop.f32.mrf.mxu0  ;;  %v524_v44 = vpop.f32.mrf.mxu1 }
  0xf5   :  { %351 = vst [vmem:[%s878_s5 + $0x8] sm:$0xff] %v335_v41  ;;  %359 = vst [vmem:[%s878_s5 + $0x48] sm:$0xff] %v343_v42  ;;  %v340_v47 = vadd.f32 %v516_v43, %v99_v39  ;;  %v348_v48 = vadd.f32 %v524_v44, %v107_v40 }
  0xf6   :  { %v287_v49 = vpop.f32.mrf.mxu0  ;;  %v319_v50 = vpop.f32.mrf.mxu1 }
  0xf7   :  { %356 = vst [vmem:[%s878_s5 + $0x30] sm:$0xff] %v340_v47  ;;  %364 = vst [vmem:[%s878_s5 + $0x70] sm:$0xff] %v348_v48  ;;  %v338_v53 = vadd.f32 %v287_v49, %v97_v45  ;;  %v346_v54 = vadd.f32 %v319_v50, %v105_v46 }
  0xf8   :  { %v517_v55 = vpop.f32.mrf.mxu0  ;;  %v525_v56 = vpop.f32.mrf.mxu1 }
  0xf9   :  { %354 = vst [vmem:[%s878_s5 + $0x20] sm:$0xff] %v338_v53  ;;  %362 = vst [vmem:[%s878_s5 + $0x60] sm:$0xff] %v346_v54  ;;  %v341_v59 = vadd.f32 %v517_v55, %v100_v51  ;;  %v349_v60 = vadd.f32 %v525_v56, %v108_v52 }
  0xfa   :  { %v290_v61 = vpop.f32.mrf.mxu0  ;;  %v322_v62 = vpop.f32.mrf.mxu1 }
  0xfb   :  { %357 = vst [vmem:[%s878_s5 + $0x38] sm:$0xff] %v341_v59  ;;  %365 = vst [vmem:[%s878_s5 + $0x78] sm:$0xff] %v349_v60  ;;  %v339_v63 = vadd.f32 %v290_v61, %v98_v57  ;;  %v347_v0 = vadd.f32 %v322_v62, %v106_v58 }
  0xfd   :  { %355 = vst [vmem:[%s878_s5 + $0x28] sm:$0xff] %v339_v63  ;;  %363 = vst [vmem:[%s878_s5 + $0x68] sm:$0xff] %v347_v0 }
  0xfe PF:  { %v369_v1 = vld [vmem:[%s878_s5] sm:$0xff]  ;;  %v370_v3 = vld [vmem:[%s878_s5 + $0x8] sm:$0xff]  ;;  %v371_v6 = vld [vmem:[%s878_s5 + $0x10] sm:$0xff] }
  0xff   :  { %v477_v2 = vld [vmem:[%s877_s4] ss:$0 sm:$0xff]  ;;  %v372_v7 = vld [vmem:[%s878_s5 + $0x18] sm:$0xff]  ;;  %v375_v13 = vld [vmem:[%s878_s5 + $0x30] sm:$0xff] }
 0x100   :  { %v392_v4 = vadd.f32 %v477_v2, %v369_v1  ;;  %v393_v5 = vadd.f32 %v477_v2, %v370_v3  ;;  %v373_v8 = vld [vmem:[%s878_s5 + $0x20] sm:$0xff]  ;;  %v394_v9 = vadd.f32 %v477_v2, %v371_v6  ;;  %v395_v10 = vadd.f32 %v477_v2, %v372_v7  ;;  %v378_v20 = vld [vmem:[%s878_s5 + $0x48] sm:$0xff]  ;;  %v379_v21 = vld [vmem:[%s878_s5 + $0x50] sm:$0xff] }
 0x101   :  { %v396_v11 = vadd.f32 %v477_v2, %v373_v8  ;;  %v398_v18 = vadd.f32 %v477_v2, %v375_v13  ;;  %v377_v19 = vld [vmem:[%s878_s5 + $0x40] sm:$0xff]  ;;  %v380_v26 = vld [vmem:[%s878_s5 + $0x58] sm:$0xff]  ;;  %v401_v32 = vadd.f32 %v477_v2, %v378_v20  ;;  %v402_v36 = vadd.f32 %v477_v2, %v379_v21 }
 0x102   :  { %v376_v14 = vld [vmem:[%s878_s5 + $0x38] sm:$0xff]  ;;  %v408_v15 = vmax.f32 %v392_v4, 0.0  ;;  %v409_v16 = vmax.f32 %v393_v5, 0.0  ;;  %v410_v22 = vmax.f32 %v394_v9, 0.0  ;;  %v411_v23 = vmax.f32 %v395_v10, 0.0  ;;  %v381_v27 = vld [vmem:[%s878_s5 + $0x60] sm:$0xff] }
 0x103   :  { %v412_v24 = vmax.f32 %v396_v11, 0.0  ;;  %v399_v25 = vadd.f32 %v477_v2, %v376_v14  ;;  %v414_v30 = vmax.f32 %v398_v18, 0.0  ;;  %v400_v31 = vadd.f32 %v477_v2, %v377_v19  ;;  %v383_v33 = vld [vmem:[%s878_s5 + $0x70] sm:$0xff]  ;;  %v384_v34 = vld [vmem:[%s878_s5 + $0x78] sm:$0xff] }
 0x104   :  { %v374_v12 = vld [vmem:[%s878_s5 + $0x28] sm:$0xff]  ;;  %424 = vst [vmem:[%s878_s5] sm:$0xff] %v408_v15  ;;  %425 = vst [vmem:[%s878_s5 + $0x8] sm:$0xff] %v409_v16  ;;  %v403_v37 = vadd.f32 %v477_v2, %v380_v26  ;;  %v404_v38 = vadd.f32 %v477_v2, %v381_v27  ;;  %v417_v40 = vmax.f32 %v401_v32, 0.0  ;;  %v406_v42 = vadd.f32 %v477_v2, %v383_v33 }
 0x105   :  { %v397_v17 = vadd.f32 %v477_v2, %v374_v12  ;;  %v382_v28 = vld [vmem:[%s878_s5 + $0x68] sm:$0xff]  ;;  %426 = vst [vmem:[%s878_s5 + $0x10] sm:$0xff] %v410_v22  ;;  %427 = vst [vmem:[%s878_s5 + $0x18] sm:$0xff] %v411_v23  ;;  %v415_v35 = vmax.f32 %v399_v25, 0.0  ;;  %v416_v39 = vmax.f32 %v400_v31, 0.0  ;;  %v418_v43 = vmax.f32 %v402_v36, 0.0 }
 0x106   :  { %428 = vst [vmem:[%s878_s5 + $0x20] sm:$0xff] %v412_v24  ;;  %430 = vst [vmem:[%s878_s5 + $0x30] sm:$0xff] %v414_v30  ;;  %v405_v41 = vadd.f32 %v477_v2, %v382_v28  ;;  %v419_v44 = vmax.f32 %v403_v37, 0.0  ;;  %v420_v45 = vmax.f32 %v404_v38, 0.0  ;;  %v407_v46 = vadd.f32 %v477_v2, %v384_v34 }
 0x107   :  { %v413_v29 = vmax.f32 %v397_v17, 0.0  ;;  %431 = vst [vmem:[%s878_s5 + $0x38] sm:$0xff] %v415_v35  ;;  %432 = vst [vmem:[%s878_s5 + $0x40] sm:$0xff] %v416_v39  ;;  %v422_v48 = vmax.f32 %v406_v42, 0.0 }
 0x108   :  { %433 = vst [vmem:[%s878_s5 + $0x48] sm:$0xff] %v417_v40  ;;  %v421_v47 = vmax.f32 %v405_v41, 0.0  ;;  %434 = vst [vmem:[%s878_s5 + $0x50] sm:$0xff] %v418_v43  ;;  %v423_v49 = vmax.f32 %v407_v46, 0.0 }
 0x109   :  { %429 = vst [vmem:[%s878_s5 + $0x28] sm:$0xff] %v413_v29  ;;  %435 = vst [vmem:[%s878_s5 + $0x58] sm:$0xff] %v419_v44 }
 0x10a   :  { %436 = vst [vmem:[%s878_s5 + $0x60] sm:$0xff] %v420_v45  ;;  %437 = vst [vmem:[%s878_s5 + $0x68] sm:$0xff] %v421_v47 }
 0x10b   :  { %438 = vst [vmem:[%s878_s5 + $0x70] sm:$0xff] %v422_v48  ;;  %439 = vst [vmem:[%s878_s5 + $0x78] sm:$0xff] %v423_v49 }

</bundles_post_ra>
